<compile_context>
chip_gen: v5e
topology: v5e:2x2
jax: 0.10.0
libtpu: 0.0.40
codegen_flags: <defaults>
</compile_context>

<pallas_src>
import functools

import jax
import jax.numpy as jnp
from jax.experimental import pallas as pl
from jax.experimental.pallas import tpu as pltpu


VEC_W = 128  # lane width used for the packed parameter-vector array


def _vmem():
    return pl.BlockSpec(memory_space=pltpu.MemorySpace.VMEM)


# ------------------------- fused Pallas kernel -------------------------


def fused_forward_kernel(
    a_ref, x_ref, invdeg_ref,
    w1l_ref, w1r_ref, w2l_ref, w2r_ref,     # SAGE weights (bf16)
    fc1w_ref, fc2w_ref,                      # MLP weights (bf16)
    vec_ref,                                 # packed f32 [10, 128] bias/BN/fc3 vectors
    out_ref,                                 # [N, out_w] f32: emb1 | emb2 | score
    *, h, h1, h2, out_w, eps,
):
    n = x_ref.shape[0]
    a = a_ref[...]            # [N, N] bf16 raw (un-normalized) adjacency counts
    x = x_ref[...]            # [N, F] bf16
    inv_deg = invdeg_ref[...]  # [N, 1] f32 exact 1/deg (0 for isolated nodes)

    # Packed parameter vectors (f32), sliced by static offsets.
    b1 = vec_ref[0:1, :h]
    b2 = vec_ref[1:2, :h]
    fc1_b = vec_ref[2:3, :h1]
    bn1_g = vec_ref[3:4, :h1]
    bn1_b = vec_ref[4:5, :h1]
    fc2_b = vec_ref[5:6, :h2]
    bn2_g = vec_ref[6:7, :h2]
    bn2_b = vec_ref[7:8, :h2]
    w3 = vec_ref[8:9, :h2]
    b3 = vec_ref[9:10, 0:1]

    # ---- SAGE layer 1: relu(mean_agg @ Wl + x @ Wr + b) (two MXU dots, no concat) ----
    agg1 = jnp.dot(a, x, preferred_element_type=jnp.float32) * inv_deg
    hid1 = (
        jnp.dot(agg1.astype(jnp.bfloat16), w1l_ref[...], preferred_element_type=jnp.float32)
        + jnp.dot(x, w1r_ref[...], preferred_element_type=jnp.float32)
        + b1
    )
    hid1 = jnp.maximum(hid1, 0.0)                    # f32 [N, H]  (emb1)
    hid1_bf = hid1.astype(jnp.bfloat16)

    # ---- SAGE layer 2 ----
    agg2 = jnp.dot(a, hid1_bf, preferred_element_type=jnp.float32) * inv_deg
    hid2 = (
        jnp.dot(agg2.astype(jnp.bfloat16), w2l_ref[...], preferred_element_type=jnp.float32)
        + jnp.dot(hid1_bf, w2r_ref[...], preferred_element_type=jnp.float32)
        + b2
    )
    hid2 = jnp.maximum(hid2, 0.0)                    # f32 [N, H]  (emb2)

    # ---- MLP head: Linear -> BatchNorm1d (batch stats, fused one-pass) -> ReLU (x2) ----
    inv_n = 1.0 / n

    def lin_bn_relu(z_bf, w_ref, b, g, beta):
        y = jnp.dot(z_bf, w_ref[...], preferred_element_type=jnp.float32) + b
        mean = jnp.sum(y, axis=0, keepdims=True) * inv_n
        msq = jnp.sum(y * y, axis=0, keepdims=True) * inv_n
        var = jnp.maximum(msq - mean * mean, 0.0)     # biased variance (PyTorch BN norm)
        yn = (y - mean) * jax.lax.rsqrt(var + eps)
        return jnp.maximum(yn * g + beta, 0.0)

    y = lin_bn_relu(hid2.astype(jnp.bfloat16), fc1w_ref, fc1_b, bn1_g, bn1_b)
    y = lin_bn_relu(y.astype(jnp.bfloat16), fc2w_ref, fc2_b, bn2_g, bn2_b)

    # ---- fc3: [N,H2] x [H2] on VPU + lane reduction (avoid 1-lane MXU result) ----
    score = jnp.sum(y * w3, axis=-1, keepdims=True) + b3   # f32 [N, 1]

    # ---- single lane-dense store: emb1 | emb2 | broadcast(score) ----
    out_ref[...] = jnp.concatenate(
        [hid1, hid2, jnp.broadcast_to(score, (n, out_w - 2 * h))], axis=-1
    )


def fused_forward(a_counts, inv_deg, x, params, eps=1e-5):
    n = x.shape[0]
    h = params["convs"][0]["wl"].shape[1]
    h1 = params["fc1_w"].shape[1]
    h2 = params["fc2_w"].shape[1]
    assert max(h, h1, h2) <= VEC_W, "packed-vector width too small for this config"
    out_w = max(128, ((2 * h + 1 + 127) // 128) * 128)   # lane-dense output slab width

    bf = jnp.bfloat16
    x_bf = x.astype(bf)
    w1l = params["convs"][0]["wl"].astype(bf)
    w1r = params["convs"][0]["wr"].astype(bf)
    w2l = params["convs"][1]["wl"].astype(bf)
    w2r = params["convs"][1]["wr"].astype(bf)
    fc1w = params["fc1_w"].astype(bf)
    fc2w = params["fc2_w"].astype(bf)

    # Pack all small per-feature vectors into one [10, 128] f32 array (one DMA).
    def pack(v):
        v = v.reshape(-1).astype(jnp.float32)
        return jnp.zeros((VEC_W,), jnp.float32).at[: v.shape[0]].set(v)

    vecs = jnp.stack(
        [
            pack(params["convs"][0]["bl"]),
            pack(params["convs"][1]["bl"]),
            pack(params["fc1_b"]), pack(params["bn1_g"]), pack(params["bn1_b"]),
            pack(params["fc2_b"]), pack(params["bn2_g"]), pack(params["bn2_b"]),
            pack(params["fc3_w"]),            # [H2,1] -> flattened row
            pack(params["fc3_b"]),
        ],
        axis=0,
    )

    inputs = (a_counts, x_bf, inv_deg, w1l, w1r, w2l, w2r, fc1w, fc2w, vecs)

    # Explicit VMEM limit sized to the actual working set (+ headroom).
    in_bytes = sum(int(t.size) * t.dtype.itemsize for t in inputs)
    out_bytes = n * out_w * 4
    vmem_bytes = int(min(96 << 20, max(4 << 20, 4 * (in_bytes + out_bytes))))

    slab = pl.pallas_call(
        functools.partial(fused_forward_kernel, h=h, h1=h1, h2=h2, out_w=out_w, eps=eps),
        out_shape=jax.ShapeDtypeStruct((n, out_w), jnp.float32),
        in_specs=[_vmem()] * len(inputs),
        out_specs=_vmem(),
        compiler_params=pltpu.CompilerParams(vmem_limit_bytes=vmem_bytes),
    )(*inputs)
    return slab


# ------------------------- glue (plain JAX, jitted) -------------------------


def build_adjacency(edge_index, num_nodes):
    # Raw (un-normalized) dense adjacency counts, source -> target, plus exact
    # f32 inverse in-degree for mean aggregation (normalization applied in-kernel).
    src = edge_index[0]
    dst = edge_index[1]
    counts = jnp.zeros((num_nodes, num_nodes), jnp.float32).at[dst, src].add(1.0)
    deg = counts.sum(axis=1, keepdims=True)
    inv_deg = jnp.where(deg > 0, 1.0 / jnp.maximum(deg, 1.0), 0.0)
    # TODO(synk): at graph scale, skip dense A entirely and do a scalar-prefetched
    # sparse segment-mean over sorted edge lists inside the kernel.
    return counts.astype(jnp.bfloat16), inv_deg


@jax.jit
def forward(params, x, edge_index):
    n = x.shape[0]
    x = x.reshape(n, -1)                          # x.flatten(start_dim=1)
    a_counts, inv_deg = build_adjacency(edge_index, n)
    slab = fused_forward(a_counts, inv_deg, x, params)
    h = params["convs"][0]["wl"].shape[1]
    emb1 = slab[:, :h]
    emb2 = slab[:, h:2 * h]
    score = slab[:, 2 * h]                        # x.squeeze()
    return score, [emb1, emb2]


def xavier_uniform(key, fan_in, fan_out):
    limit = (6.0 / (fan_in + fan_out)) ** 0.5
    return jax.random.uniform(key, (fan_in, fan_out), jnp.float32, -limit, limit)


def init_params(key, in_features, hidden_channels, hidden1, hidden2):
    keys = jax.random.split(key, 8)
    params = {"convs": []}
    # SAGEConv 1: lin_l (aggregated neighbors, with bias), lin_r (self, no bias)
    params["convs"].append(
        dict(
            wl=xavier_uniform(keys[0], in_features, hidden_channels),
            bl=jnp.zeros((hidden_channels,), jnp.float32),
            wr=xavier_uniform(keys[1], in_features, hidden_channels),
        )
    )
    # SAGEConv 2
    params["convs"].append(
        dict(
            wl=xavier_uniform(keys[2], hidden_channels, hidden_channels),
            bl=jnp.zeros((hidden_channels,), jnp.float32),
            wr=xavier_uniform(keys[3], hidden_channels, hidden_channels),
        )
    )
    # MLP head: Linear->BN->ReLU->Linear->BN->ReLU->Linear(1)
    params["fc1_w"] = xavier_uniform(keys[4], hidden_channels, hidden1)
    params["fc1_b"] = jnp.zeros((hidden1,), jnp.float32)
    params["bn1_g"] = jnp.ones((hidden1,), jnp.float32)
    params["bn1_b"] = jnp.zeros((hidden1,), jnp.float32)
    params["fc2_w"] = xavier_uniform(keys[5], hidden1, hidden2)
    params["fc2_b"] = jnp.zeros((hidden2,), jnp.float32)
    params["bn2_g"] = jnp.ones((hidden2,), jnp.float32)
    params["bn2_b"] = jnp.zeros((hidden2,), jnp.float32)
    params["fc3_w"] = xavier_uniform(keys[6], hidden2, 1)
    params["fc3_b"] = jnp.zeros((1,), jnp.float32)
    return params


if __name__ == "__main__":
    key = jax.random.PRNGKey(0)
    k_x, k_e, k_p = jax.random.split(key, 3)

    num_nodes = 16
    # node features [N, 4, 8] -> flattened inside forward to [N, 32]
    x = jax.random.normal(k_x, (num_nodes, 4, 8), jnp.float32)
    num_edges = 48
    edge_index = jax.random.randint(k_e, (2, num_edges), 0, num_nodes, jnp.int32)

    hidden_channels = 32
    params = init_params(
        k_p, in_features=4 * 8, hidden_channels=hidden_channels, hidden1=128, hidden2=64
    )

    out, embeddings = forward(params, x, edge_index)
    jax.block_until_ready(out)
    for e in embeddings:
        jax.block_until_ready(e)

    assert out.shape == (num_nodes,)
    assert embeddings[0].shape == (num_nodes, hidden_channels)
    assert embeddings[1].shape == (num_nodes, hidden_channels)
    assert bool(jnp.all(jnp.isfinite(out)))
    assert bool(jnp.all(jnp.isfinite(embeddings[0])))
    assert bool(jnp.all(jnp.isfinite(embeddings[1])))
    print("KERNEL_OK")
</pallas_src>

<mosaic_0001>
module attributes {stable_mosaic.version = 11 : i64} {
  func.func @fused_forward_kernel(%arg0: memref<16x16xbf16, #tpu.memory_space<vmem>>, %arg1: memref<16x32xbf16, #tpu.memory_space<vmem>>, %arg2: memref<16x1xf32, #tpu.memory_space<vmem>>, %arg3: memref<32x32xbf16, #tpu.memory_space<vmem>>, %arg4: memref<32x32xbf16, #tpu.memory_space<vmem>>, %arg5: memref<32x32xbf16, #tpu.memory_space<vmem>>, %arg6: memref<32x32xbf16, #tpu.memory_space<vmem>>, %arg7: memref<32x128xbf16, #tpu.memory_space<vmem>>, %arg8: memref<128x64xbf16, #tpu.memory_space<vmem>>, %arg9: memref<10x128xf32, #tpu.memory_space<vmem>>, %arg10: memref<16x128xf32, #tpu.memory_space<vmem>>) attributes {dimension_semantics = [], scalar_prefetch = 0 : i64, scratch_operands = 0 : i64, tpu.core_type = #tpu.core_type<tc>} {
    %c0 = arith.constant 0 : index
    %c0_0 = arith.constant 0 : index
    %0 = vector.load %arg0[%c0, %c0_0] : memref<16x16xbf16, #tpu.memory_space<vmem>>, vector<16x16xbf16>
    %c0_1 = arith.constant 0 : index
    %c0_2 = arith.constant 0 : index
    %1 = vector.load %arg1[%c0_1, %c0_2] : memref<16x32xbf16, #tpu.memory_space<vmem>>, vector<16x32xbf16>
    %c0_3 = arith.constant 0 : index
    %c0_4 = arith.constant 0 : index
    %2 = vector.load %arg2[%c0_3, %c0_4] : memref<16x1xf32, #tpu.memory_space<vmem>>, vector<16x1xf32>
    %c0_5 = arith.constant 0 : index
    %c0_6 = arith.constant 0 : index
    %3 = vector.load %arg9[%c0_5, %c0_6] : memref<10x128xf32, #tpu.memory_space<vmem>>, vector<1x32xf32>
    %c1 = arith.constant 1 : index
    %c0_7 = arith.constant 0 : index
    %4 = vector.load %arg9[%c1, %c0_7] : memref<10x128xf32, #tpu.memory_space<vmem>>, vector<1x32xf32>
    %c2 = arith.constant 2 : index
    %c0_8 = arith.constant 0 : index
    %5 = vector.load %arg9[%c2, %c0_8] : memref<10x128xf32, #tpu.memory_space<vmem>>, vector<1x128xf32>
    %c3 = arith.constant 3 : index
    %c0_9 = arith.constant 0 : index
    %6 = vector.load %arg9[%c3, %c0_9] : memref<10x128xf32, #tpu.memory_space<vmem>>, vector<1x128xf32>
    %c4 = arith.constant 4 : index
    %c0_10 = arith.constant 0 : index
    %7 = vector.load %arg9[%c4, %c0_10] : memref<10x128xf32, #tpu.memory_space<vmem>>, vector<1x128xf32>
    %c5 = arith.constant 5 : index
    %c0_11 = arith.constant 0 : index
    %8 = vector.load %arg9[%c5, %c0_11] : memref<10x128xf32, #tpu.memory_space<vmem>>, vector<1x64xf32>
    %c6 = arith.constant 6 : index
    %c0_12 = arith.constant 0 : index
    %9 = vector.load %arg9[%c6, %c0_12] : memref<10x128xf32, #tpu.memory_space<vmem>>, vector<1x64xf32>
    %c7 = arith.constant 7 : index
    %c0_13 = arith.constant 0 : index
    %10 = vector.load %arg9[%c7, %c0_13] : memref<10x128xf32, #tpu.memory_space<vmem>>, vector<1x64xf32>
    %c8 = arith.constant 8 : index
    %c0_14 = arith.constant 0 : index
    %11 = vector.load %arg9[%c8, %c0_14] : memref<10x128xf32, #tpu.memory_space<vmem>>, vector<1x64xf32>
    %c9 = arith.constant 9 : index
    %c0_15 = arith.constant 0 : index
    %12 = vector.load %arg9[%c9, %c0_15] : memref<10x128xf32, #tpu.memory_space<vmem>>, vector<1x1xf32>
    %cst = arith.constant dense<0.000000e+00> : vector<16x32xf32>
    %13 = tpu.matmul %0, %1, %cst {dimension_numbers = #tpu.dot_dimension_numbers<[1], [0], [0], [1], [0, 0, 1, 1], [], []>} : vector<16x16xbf16>, vector<16x32xbf16>, vector<16x32xf32> -> vector<16x32xf32>
    %14 = vector.broadcast %2 : vector<16x1xf32> to vector<16x32xf32>
    %15 = arith.mulf %13, %14 : vector<16x32xf32>
    %16 = arith.truncf %15 : vector<16x32xf32> to vector<16x32xbf16>
    %c0_16 = arith.constant 0 : index
    %c0_17 = arith.constant 0 : index
    %17 = vector.load %arg3[%c0_16, %c0_17] : memref<32x32xbf16, #tpu.memory_space<vmem>>, vector<32x32xbf16>
    %cst_18 = arith.constant dense<0.000000e+00> : vector<16x32xf32>
    %18 = tpu.matmul %16, %17, %cst_18 {dimension_numbers = #tpu.dot_dimension_numbers<[1], [0], [0], [1], [0, 0, 1, 1], [], []>} : vector<16x32xbf16>, vector<32x32xbf16>, vector<16x32xf32> -> vector<16x32xf32>
    %c0_19 = arith.constant 0 : index
    %c0_20 = arith.constant 0 : index
    %19 = vector.load %arg4[%c0_19, %c0_20] : memref<32x32xbf16, #tpu.memory_space<vmem>>, vector<32x32xbf16>
    %cst_21 = arith.constant dense<0.000000e+00> : vector<16x32xf32>
    %20 = tpu.matmul %1, %19, %cst_21 {dimension_numbers = #tpu.dot_dimension_numbers<[1], [0], [0], [1], [0, 0, 1, 1], [], []>} : vector<16x32xbf16>, vector<32x32xbf16>, vector<16x32xf32> -> vector<16x32xf32>
    %21 = arith.addf %18, %20 : vector<16x32xf32>
    %22 = vector.broadcast %3 : vector<1x32xf32> to vector<16x32xf32>
    %23 = arith.addf %21, %22 : vector<16x32xf32>
    %cst_22 = arith.constant 0.000000e+00 : f32
    %24 = vector.broadcast %cst_22 : f32 to vector<16x32xf32>
    %25 = arith.maximumf %23, %24 : vector<16x32xf32>
    %26 = arith.truncf %25 : vector<16x32xf32> to vector<16x32xbf16>
    %cst_23 = arith.constant dense<0.000000e+00> : vector<16x32xf32>
    %27 = tpu.matmul %0, %26, %cst_23 {dimension_numbers = #tpu.dot_dimension_numbers<[1], [0], [0], [1], [0, 0, 1, 1], [], []>} : vector<16x16xbf16>, vector<16x32xbf16>, vector<16x32xf32> -> vector<16x32xf32>
    %28 = vector.broadcast %2 : vector<16x1xf32> to vector<16x32xf32>
    %29 = arith.mulf %27, %28 : vector<16x32xf32>
    %30 = arith.truncf %29 : vector<16x32xf32> to vector<16x32xbf16>
    %c0_24 = arith.constant 0 : index
    %c0_25 = arith.constant 0 : index
    %31 = vector.load %arg5[%c0_24, %c0_25] : memref<32x32xbf16, #tpu.memory_space<vmem>>, vector<32x32xbf16>
    %cst_26 = arith.constant dense<0.000000e+00> : vector<16x32xf32>
    %32 = tpu.matmul %30, %31, %cst_26 {dimension_numbers = #tpu.dot_dimension_numbers<[1], [0], [0], [1], [0, 0, 1, 1], [], []>} : vector<16x32xbf16>, vector<32x32xbf16>, vector<16x32xf32> -> vector<16x32xf32>
    %c0_27 = arith.constant 0 : index
    %c0_28 = arith.constant 0 : index
    %33 = vector.load %arg6[%c0_27, %c0_28] : memref<32x32xbf16, #tpu.memory_space<vmem>>, vector<32x32xbf16>
    %cst_29 = arith.constant dense<0.000000e+00> : vector<16x32xf32>
    %34 = tpu.matmul %26, %33, %cst_29 {dimension_numbers = #tpu.dot_dimension_numbers<[1], [0], [0], [1], [0, 0, 1, 1], [], []>} : vector<16x32xbf16>, vector<32x32xbf16>, vector<16x32xf32> -> vector<16x32xf32>
    %35 = arith.addf %32, %34 : vector<16x32xf32>
    %36 = vector.broadcast %4 : vector<1x32xf32> to vector<16x32xf32>
    %37 = arith.addf %35, %36 : vector<16x32xf32>
    %cst_30 = arith.constant 0.000000e+00 : f32
    %38 = vector.broadcast %cst_30 : f32 to vector<16x32xf32>
    %39 = arith.maximumf %37, %38 : vector<16x32xf32>
    %40 = arith.truncf %39 : vector<16x32xf32> to vector<16x32xbf16>
    %c0_31 = arith.constant 0 : index
    %c0_32 = arith.constant 0 : index
    %41 = vector.load %arg7[%c0_31, %c0_32] : memref<32x128xbf16, #tpu.memory_space<vmem>>, vector<32x128xbf16>
    %cst_33 = arith.constant dense<0.000000e+00> : vector<16x128xf32>
    %42 = tpu.matmul %40, %41, %cst_33 {dimension_numbers = #tpu.dot_dimension_numbers<[1], [0], [0], [1], [0, 0, 1, 1], [], []>} : vector<16x32xbf16>, vector<32x128xbf16>, vector<16x128xf32> -> vector<16x128xf32>
    %43 = vector.broadcast %5 : vector<1x128xf32> to vector<16x128xf32>
    %44 = arith.addf %42, %43 : vector<16x128xf32>
    %cst_34 = arith.constant dense<0.000000e+00> : vector<128xf32>
    %45 = vector.multi_reduction <add>, %44, %cst_34 [0] : vector<16x128xf32> to vector<128xf32>
    %46 = vector.shape_cast %45 : vector<128xf32> to vector<1x128xf32>
    %cst_35 = arith.constant 6.250000e-02 : f32
    %47 = vector.broadcast %cst_35 : f32 to vector<1x128xf32>
    %48 = arith.mulf %46, %47 : vector<1x128xf32>
    %49 = arith.mulf %44, %44 : vector<16x128xf32>
    %cst_36 = arith.constant dense<0.000000e+00> : vector<128xf32>
    %50 = vector.multi_reduction <add>, %49, %cst_36 [0] : vector<16x128xf32> to vector<128xf32>
    %51 = vector.shape_cast %50 : vector<128xf32> to vector<1x128xf32>
    %cst_37 = arith.constant 6.250000e-02 : f32
    %52 = vector.broadcast %cst_37 : f32 to vector<1x128xf32>
    %53 = arith.mulf %51, %52 : vector<1x128xf32>
    %54 = arith.mulf %48, %48 : vector<1x128xf32>
    %55 = arith.subf %53, %54 : vector<1x128xf32>
    %cst_38 = arith.constant 0.000000e+00 : f32
    %56 = vector.broadcast %cst_38 : f32 to vector<1x128xf32>
    %57 = arith.maximumf %55, %56 : vector<1x128xf32>
    %58 = vector.broadcast %48 : vector<1x128xf32> to vector<16x128xf32>
    %59 = arith.subf %44, %58 : vector<16x128xf32>
    %cst_39 = arith.constant 9.99999974E-6 : f32
    %60 = vector.broadcast %cst_39 : f32 to vector<1x128xf32>
    %61 = arith.addf %57, %60 : vector<1x128xf32>
    %62 = math.rsqrt %61 : vector<1x128xf32>
    %63 = vector.broadcast %62 : vector<1x128xf32> to vector<16x128xf32>
    %64 = arith.mulf %59, %63 : vector<16x128xf32>
    %65 = vector.broadcast %6 : vector<1x128xf32> to vector<16x128xf32>
    %66 = arith.mulf %64, %65 : vector<16x128xf32>
    %67 = vector.broadcast %7 : vector<1x128xf32> to vector<16x128xf32>
    %68 = arith.addf %66, %67 : vector<16x128xf32>
    %cst_40 = arith.constant 0.000000e+00 : f32
    %69 = vector.broadcast %cst_40 : f32 to vector<16x128xf32>
    %70 = arith.maximumf %68, %69 : vector<16x128xf32>
    %71 = arith.truncf %70 : vector<16x128xf32> to vector<16x128xbf16>
    %c0_41 = arith.constant 0 : index
    %c0_42 = arith.constant 0 : index
    %72 = vector.load %arg8[%c0_41, %c0_42] : memref<128x64xbf16, #tpu.memory_space<vmem>>, vector<128x64xbf16>
    %cst_43 = arith.constant dense<0.000000e+00> : vector<16x64xf32>
    %73 = tpu.matmul %71, %72, %cst_43 {dimension_numbers = #tpu.dot_dimension_numbers<[1], [0], [0], [1], [0, 0, 1, 1], [], []>} : vector<16x128xbf16>, vector<128x64xbf16>, vector<16x64xf32> -> vector<16x64xf32>
    %74 = vector.broadcast %8 : vector<1x64xf32> to vector<16x64xf32>
    %75 = arith.addf %73, %74 : vector<16x64xf32>
    %cst_44 = arith.constant dense<0.000000e+00> : vector<64xf32>
    %76 = vector.multi_reduction <add>, %75, %cst_44 [0] : vector<16x64xf32> to vector<64xf32>
    %77 = vector.shape_cast %76 : vector<64xf32> to vector<1x64xf32>
    %cst_45 = arith.constant 6.250000e-02 : f32
    %78 = vector.broadcast %cst_45 : f32 to vector<1x64xf32>
    %79 = arith.mulf %77, %78 : vector<1x64xf32>
    %80 = arith.mulf %75, %75 : vector<16x64xf32>
    %cst_46 = arith.constant dense<0.000000e+00> : vector<64xf32>
    %81 = vector.multi_reduction <add>, %80, %cst_46 [0] : vector<16x64xf32> to vector<64xf32>
    %82 = vector.shape_cast %81 : vector<64xf32> to vector<1x64xf32>
    %cst_47 = arith.constant 6.250000e-02 : f32
    %83 = vector.broadcast %cst_47 : f32 to vector<1x64xf32>
    %84 = arith.mulf %82, %83 : vector<1x64xf32>
    %85 = arith.mulf %79, %79 : vector<1x64xf32>
    %86 = arith.subf %84, %85 : vector<1x64xf32>
    %cst_48 = arith.constant 0.000000e+00 : f32
    %87 = vector.broadcast %cst_48 : f32 to vector<1x64xf32>
    %88 = arith.maximumf %86, %87 : vector<1x64xf32>
    %89 = vector.broadcast %79 : vector<1x64xf32> to vector<16x64xf32>
    %90 = arith.subf %75, %89 : vector<16x64xf32>
    %cst_49 = arith.constant 9.99999974E-6 : f32
    %91 = vector.broadcast %cst_49 : f32 to vector<1x64xf32>
    %92 = arith.addf %88, %91 : vector<1x64xf32>
    %93 = math.rsqrt %92 : vector<1x64xf32>
    %94 = vector.broadcast %93 : vector<1x64xf32> to vector<16x64xf32>
    %95 = arith.mulf %90, %94 : vector<16x64xf32>
    %96 = vector.broadcast %9 : vector<1x64xf32> to vector<16x64xf32>
    %97 = arith.mulf %95, %96 : vector<16x64xf32>
    %98 = vector.broadcast %10 : vector<1x64xf32> to vector<16x64xf32>
    %99 = arith.addf %97, %98 : vector<16x64xf32>
    %cst_50 = arith.constant 0.000000e+00 : f32
    %100 = vector.broadcast %cst_50 : f32 to vector<16x64xf32>
    %101 = arith.maximumf %99, %100 : vector<16x64xf32>
    %102 = vector.broadcast %11 : vector<1x64xf32> to vector<16x64xf32>
    %103 = arith.mulf %101, %102 : vector<16x64xf32>
    %cst_51 = arith.constant dense<0.000000e+00> : vector<16xf32>
    %104 = vector.multi_reduction <add>, %103, %cst_51 [1] : vector<16x64xf32> to vector<16xf32>
    %105 = vector.shape_cast %104 : vector<16xf32> to vector<16x1xf32>
    %106 = vector.broadcast %12 : vector<1x1xf32> to vector<16x1xf32>
    %107 = arith.addf %105, %106 : vector<16x1xf32>
    %108 = vector.shape_cast %107 : vector<16x1xf32> to vector<16x1xf32>
    %109 = vector.broadcast %108 : vector<16x1xf32> to vector<16x64xf32>
    %110 = tpu.concatenate %25, %39, %109 in 1 : vector<16x32xf32>, vector<16x32xf32>, vector<16x64xf32> -> vector<16x128xf32>
    %c0_52 = arith.constant 0 : index
    %c0_53 = arith.constant 0 : index
    %111 = vector.load %arg10[%c0_52, %c0_53] : memref<16x128xf32, #tpu.memory_space<vmem>>, vector<16x128xf32>
    tpu.vector_store %arg10[%c0_52, %c0_53], %110 {strides = array<i32>} : memref<16x128xf32, #tpu.memory_space<vmem>>, vector<16x128xf32>,
    return
  }
}

</mosaic_0001>

<bundles_post_ra>
// kernel: forward.1
= control target key start
LH: loop header
LB: loop body
LE: loop exit
PB: predicated region body
PF: predicated region fallthrough
CT: control target
= control target key end

     0   :  { %v628_v1 = vmov 0   ;;  %vm63_vm0 = vcmask 130048   ;;  %vm114_vm1 = vcmask 261120   ;;  %s629_s18 = smov 32   ;;  %vm414_vm5 = vcmask 523264   ;;  %s818_s1 = inlined_call_operand.vmem [shape: bf16[16,32], index: 1, kind: input, shape index: {}]   ;;  %s819_s0 = inlined_call_operand.vmem [shape: bf16[16,16], index: 0, kind: input, shape index: {}]   ;;  %s820_s2 = inlined_call_operand.vmem [shape: f32[16,1], index: 2, kind: input, shape index: {}]   ;;  %s821_s3 = inlined_call_operand.vmem [shape: bf16[32,32], index: 3, kind: input, shape index: {}]   ;;  %s822_s4 = inlined_call_operand.vmem [shape: bf16[32,32], index: 4, kind: input, shape index: {}]   ;;  %s823_s9 = inlined_call_operand.vmem [shape: f32[10,128], index: 9, kind: input, shape index: {}]   ;;  %s824_s6 = inlined_call_operand.vmem [shape: bf16[32,32], index: 6, kind: input, shape index: {}]   ;;  %s825_s5 = inlined_call_operand.vmem [shape: bf16[32,32], index: 5, kind: input, shape index: {}]   ;;  %s826_s7 = inlined_call_operand.vmem [shape: bf16[32,128], index: 7, kind: input, shape index: {}]   ;;  %s827_s8 = inlined_call_operand.vmem [shape: bf16[128,64], index: 8, kind: input, shape index: {}]   ;;  %s828_s10 = inlined_call_operand.vmem [shape: f32[16,128], index: 10, kind: output, shape index: {}]  }
   0x1   :  { %v591_v0 = vld [vmem:[%s818_s1] sm:$0xff]  ;;  %612 = vset.pattern.permute.xlu0 %v628_v1  ;;  %613 = vset.pattern.permute.xlu1 %v628_v1  ;;  %v41_v4 = vld [vmem:[%s820_s2 + $0x8] sm:$0xff]  ;;  %v609_v51 = vld [vmem:[%s827_s8 + $0x38] sm:$0xff] }
   0x2   :  { %v40_v2 = vld [vmem:[%s820_s2] sm:$0xff]  ;;  %74 = vmatpush.bf16.msra.mxu0 %v591_v0  ;;  %v593_v5 = vld [vmem:[%s821_s3 + $0x8] sm:$0xff]  ;;  %400 = vmatpush.bf16.msra.mxu2 %v609_v51  ;;  %v608_v53 = vld [vmem:[%s827_s8 + $0x30] sm:$0xff] }
   0x3   :  { %v590_v3 = vld [vmem:[%s819_s0] sm:$0xff]  ;;  %83 = vperm.xlu0 %612, %v40_v2   ;;  %v595_v6 = vld [vmem:[%s822_s4 + $0x8] sm:$0xff]  ;;  %v605_v1 = vld [vmem:[%s827_s8 + $0x18] sm:$0xff] }
   0x4   :  { %124 = vmatpush.bf16.msra.mxu1 %v595_v6  ;;  %v594_v7 = vld [vmem:[%s822_s4] sm:$0xff]  ;;  %v599_v16 = vld [vmem:[%s824_s6 + $0x8] sm:$0xff]  ;;  %v604_v6 = vld [vmem:[%s827_s8 + $0x10] sm:$0xff] }
   0x5   :  { %511 = vmatmul.msk.bf16.vlgmr.msra.gmra.mxu0 %vm63_vm0, %v590_v3  ;;  %v592_v8 = vld [vmem:[%s821_s3] sm:$0xff]  ;;  %v597_v30 = vld [vmem:[%s825_s5 + $0x8] sm:$0xff] }
   0x6   :  { %153 = vmatpush.bf16.msrb.mxu0 %v593_v5  ;;  %v598_v17 = vld [vmem:[%s824_s6] sm:$0xff]  ;;  %v601_v37 = vld [vmem:[%s826_s7 + $0x8] sm:$0xff]  ;;  %401 = vmatpush.bf16.msra.mxu2 %v608_v53 }
   0x7   :  { %v614_v21 = vld [vmem:[%s823_s9] ss:$0 sm:$0xff]  ;;  %v615_v40 = vld [vmem:[%s823_s9 + $0x1] ss:$0 sm:$0xff]  ;;  %v616_v54 = vld [vmem:[%s823_s9 + $0x2] ss:$0 sm:$0xff] }
   0x8   :  { %125 = vmatpush.bf16.msra.mxu1 %v594_v7  ;;  %v596_v31 = vld [vmem:[%s825_s5] sm:$0xff]  ;;  %v607_v55 = vld [vmem:[%s827_s8 + $0x28] sm:$0xff] }
   0x9   :  { %v600_v38 = vld [vmem:[%s826_s7] sm:$0xff] }
   0xa   :  { %154 = vmatpush.bf16.msrb.mxu0 %v592_v8  ;;  %402 = vmatpush.bf16.msra.mxu2 %v607_v55  ;;  %v606_v59 = vld [vmem:[%s827_s8 + $0x20] sm:$0xff] }
   0xb   :  { %88 = vperm.xlu0 %612, %v41_v4   ;;  %520 = vmatmul.msk.bf16.vlgmr.msra.gmra.mxu1 %vm114_vm1, %v591_v0 }
   0xc   :  { %282 = vmatpush.bf16.msrb.mxu1 %v601_v37 }
   0xe   :  { %213 = vmatpush.bf16.msra.mxu0 %v599_v16  ;;  %403 = vmatpush.bf16.msra.mxu2 %v606_v59 }
  0x10   :  { %283 = vmatpush.bf16.msrb.mxu1 %v600_v38  ;;  %v618_v38 = vld [vmem:[%s823_s9 + $0x4] ss:$0 sm:$0xff] }
  0x12   :  { %214 = vmatpush.bf16.msra.mxu0 %v598_v17  ;;  %404 = vmatpush.bf16.msra.mxu2 %v605_v1 }
  0x16   :  { %405 = vmatpush.bf16.msra.mxu2 %v604_v6 }
  0x75   :  { %v84_v9 = vpop.permute.xlu0 %83 }
  0x7d   :  { %v89_v11 = vpop.permute.xlu0 %88 }
  0x82   :  { %v76_v10 = vpop.f32.mrf.mxu0 }
  0x83   :  { %v91_v13 = vmul.f32 %v84_v9, %v76_v10 }
  0x88   :  { %v127_v18 = vpop.f32.mrf.mxu1 }
  0x8a   :  { %v78_v12 = vpop.f32.mrf.mxu0 }
  0x8b   :  { %v92_v14 = vmul.f32 %v89_v11, %v78_v12 }
  0x8d   :  { %v93_v15 = vpack.c.bf16 %v92_v14, %v91_v13  ;;  %v602_v14 = vld [vmem:[%s827_s8] sm:$0xff] }
  0x8f   :  { %529 = vmatmul.msk.bf16.vlgmr.msrb.gmra.mxu0 %vm114_vm1, %v93_v15 }
  0x90   :  { %v129_v22 = vpop.f32.mrf.mxu1 }
 0x10c   :  { %v156_v19 = vpop.f32.mrf.mxu0 }
 0x10d   :  { %v157_v20 = vadd.f32 %v156_v19, %v127_v18 }
 0x10f   :  { %v721_v24 = vadd.f32 %v614_v21, %v157_v20 }
 0x111   :  { %v164_v27 = vmax.f32 %v721_v24, 0.0 }
 0x114   :  { %v158_v23 = vpop.f32.mrf.mxu0 }
 0x115   :  { %v159_v25 = vadd.f32 %v158_v23, %v129_v22 }
 0x117   :  { %v723_v26 = vadd.f32 %v614_v21, %v159_v25 }
 0x119   :  { %v165_v28 = vmax.f32 %v723_v26, 0.0 }
 0x11b   :  { %v166_v29 = vpack.c.bf16 %v165_v28, %v164_v27 }
 0x11d   :  { %174 = vmatpush.bf16.msra.mxu3 %v166_v29  ;;  %539 = vmatmul.msk.bf16.vlgmr.msra.gmra.mxu0 %vm114_vm1, %v166_v29 }
 0x120   :  { %530 = vmatmul.msk.bf16.vlgmr.msra.gmra.mxu3 %vm63_vm0, %v590_v3 }
 0x121   :  { %242 = vmatpush.bf16.msrb.mxu3 %v597_v30 }
 0x125   :  { %243 = vmatpush.bf16.msrb.mxu3 %v596_v31 }
 0x19a   :  { %v216_v39 = vpop.f32.mrf.mxu0 }
 0x1a2   :  { %v218_v45 = vpop.f32.mrf.mxu0 }
 0x1a3   :  { %v176_v32 = vpop.f32.mrf.mxu3 }
 0x1a4   :  { %v181_v34 = vmul.f32 %v176_v32, %v84_v9 }
 0x1ab   :  { %v178_v33 = vpop.f32.mrf.mxu3 }
 0x1ac   :  { %v182_v35 = vmul.f32 %v178_v33, %v89_v11  ;;  %v603_v11 = vld [vmem:[%s827_s8 + $0x8] sm:$0xff] }
 0x1ad   :  { %406 = vmatpush.bf16.msra.mxu2 %v603_v11 }
 0x1ae   :  { %v183_v36 = vpack.c.bf16 %v182_v35, %v181_v34  ;;  %v617_v34 = vld [vmem:[%s823_s9 + $0x3] ss:$0 sm:$0xff] }
 0x1b0   :  { %548 = vmatmul.msk.bf16.vlgmr.msrb.gmra.mxu3 %vm114_vm1, %v183_v36 }
 0x1b1   :  { %407 = vmatpush.bf16.msra.mxu2 %v602_v14 }
 0x233   :  { %v245_v41 = vpop.f32.mrf.mxu3 }
 0x234   :  { %v246_v42 = vadd.f32 %v245_v41, %v216_v39 }
 0x236   :  { %v251_v43 = vadd.f32 %v615_v40, %v246_v42 }
 0x238   :  { %v253_v44 = vmax.f32 %v251_v43, 0.0 }
 0x23a   :  { %487 = vrot.lane.b32.xlu2 %v253_v44, %s629_s18 }
 0x23b   :  { %v247_v46 = vpop.f32.mrf.mxu3 }
 0x23c   :  { %v248_v47 = vadd.f32 %v247_v46, %v218_v45 }
 0x23e   :  { %v252_v48 = vadd.f32 %v615_v40, %v248_v47  ;;  %v619_v47 = vld [vmem:[%s823_s9 + $0x5] ss:$0 sm:$0xff] }
 0x240   :  { %v254_v49 = vmax.f32 %v252_v48, 0.0 }
 0x242   :  { %v255_v50 = vpack.c.bf16 %v254_v49, %v253_v44  ;;  %489 = vrot.lane.b32.xlu2 %v254_v49, %s629_s18 }
 0x244   :  { %557 = vmatmul.msk.bf16.vlgmr.msrb.gmra.mxu1 %vm114_vm1, %v255_v50 }
 0x2c1   :  { %v285_v52 = vpop.f32.mrf.mxu1 }
 0x2c2   :  { %v286_v56 = vadd.f32 %v616_v54, %v285_v52 }
 0x2c4   :  { %v298_v60 = vmul.f32 %v286_v56, %v286_v56 }
 0x2c9   :  { %v287_v57 = vpop.f32.mrf.mxu1 }
 0x2ca   :  { %v288_v58 = vadd.f32 %v616_v54, %v287_v57 }
 0x2cc   :  { %v290_v61 = vadd.f32 %v288_v58, %v286_v56  ;;  %v299_v62 = vmul.f32 %v288_v58, %v288_v58 }
 0x2ce   :  { %v291_v63 = vrot.slane %v290_v61, 4  ;;  %v300_v0 = vadd.f32 %v299_v62, %v298_v60 }
 0x2d0   :  { %v292_v2 = vadd.f32 %v291_v63, %v290_v61  ;;  %v301_v3 = vrot.slane %v300_v0, 4 }
 0x2d2   :  { %v293_v4 = vrot.slane %v292_v2, 2  ;;  %v302_v5 = vadd.f32 %v301_v3, %v300_v0 }
 0x2d4   :  { %v294_v7 = vadd.f32 %v293_v4, %v292_v2  ;;  %v303_v8 = vrot.slane %v302_v5, 2 }
 0x2d6   :  { %v295_v9 = vrot.slane %v294_v7, 1  ;;  %v304_v10 = vadd.f32 %v303_v8, %v302_v5 }
 0x2d8   :  { %v296_v12 = vadd.f32 %v295_v9, %v294_v7  ;;  %v305_v13 = vrot.slane %v304_v10, 1 }
 0x2da   :  { %v297_v15 = vmul.f32 0.0625, %v296_v12  ;;  %v306_v16 = vadd.f32 %v305_v13, %v304_v10 }
 0x2dc   :  { %v307_v17 = vmul.f32 0.0625, %v306_v16  ;;  %v308_v18 = vmul.f32 %v297_v15, %v297_v15  ;;  %v312_v32 = vsub.f32 %v288_v58, %v297_v15  ;;  %v311_v33 = vsub.f32 %v286_v56, %v297_v15 }
 0x2de   :  { %v309_v19 = vsub.f32 %v307_v17, %v308_v18 }
 0x2e0   :  { %v310_v20 = vmax.f32 %v309_v19, 0.0 }
 0x2e2   :  { %v313_v21 = vadd.f32 1e-05, %v310_v20 }
 0x2e4   :  { %624 = vrsqrt.f32 %v313_v21  ;;  %vm320_vm3 = vweird.f32 %v313_v21 }
 0x2ea   :  { %v625_v22 = vpop.eup %624 }
 0x2eb   :  { %v315_v23 = vmul.f32 %v625_v22, %v313_v21  ;;  %vm321_vm2 = vweird.f32 %v625_v22  ;;  %v620_v21 = vld [vmem:[%s823_s9 + $0x6] ss:$0 sm:$0xff] }
 0x2ec   :  { %vm322_vm4 = vmor %vm320_vm3, %vm321_vm2 }
 0x2ed   :  { %v316_v25 = vmul.f32 %v625_v22, %v315_v23 }
 0x2ef   :  { %v317_v29 = vmul.f32 0.5, %v316_v25 }
 0x2f1   :  { %v318_v30 = vsub.f32 1.5, %v317_v29  ;;  %v621_v29 = vld [vmem:[%s823_s9 + $0x7] ss:$0 sm:$0xff] }
 0x2f3   :  { %v319_v31 = vmul.f32 %v625_v22, %v318_v30 }
 0x2f5   :  { %v323_v35 = vsel %vm322_vm4, %v625_v22, %v319_v31 }
 0x2f6   :  { %v325_v36 = vmul.f32 %v323_v35, %v312_v32  ;;  %v324_v37 = vmul.f32 %v323_v35, %v311_v33  ;;  %v622_v33 = vld [vmem:[%s823_s9 + $0x8] ss:$0 sm:$0xff] }
 0x2f8   :  { %v327_v39 = vmul.f32 %v617_v34, %v324_v37  ;;  %v328_v40 = vmul.f32 %v617_v34, %v325_v36 }
 0x2fa   :  { %v330_v41 = vadd.f32 %v618_v38, %v327_v39  ;;  %v331_v42 = vadd.f32 %v618_v38, %v328_v40 }
 0x2fc   :  { %v332_v43 = vmax.f32 %v330_v41, 0.0  ;;  %v333_v44 = vmax.f32 %v331_v42, 0.0  ;;  %v623_v41 = vld [vmem:[%s823_s9 + $0x9] ss:$0 sm:$0xff] }
 0x2fe   :  { %v334_v45 = vpack.c.bf16 %v333_v44, %v332_v43 }
 0x300   :  { %408 = vmatmul.bf16.vlgmr.msra.gmra.mxu2 %v334_v45 }
 0x383   :  { %v409_v46 = vpop.f32.mrf.mxu2 }
 0x384   :  { %v410_v48 = vadd.f32 %v619_v47, %v409_v46  ;;  %v488_v46 = vpop.permute.xlu2 %487 }
 0x386   :  { %v425_v50 = vmul.f32 %v410_v48, %v410_v48  ;;  %v415_v52 = vsel %vm414_vm5, %v410_v48, 0.0 }
 0x388   :  { %v427_v56 = vsel %vm414_vm5, %v425_v50, 0.0 }
 0x38b   :  { %v411_v49 = vpop.f32.mrf.mxu2 }
 0x38c   :  { %v412_v51 = vadd.f32 %v619_v47, %v411_v49  ;;  %v493_v47 = vsel %vm114_vm1, %v164_v27, %v488_v46  ;;  %v490_v50 = vpop.permute.xlu2 %489 }
 0x38e   :  { %v416_v53 = vsel %vm414_vm5, %v412_v51, 0.0  ;;  %v426_v54 = vmul.f32 %v412_v51, %v412_v51 }
 0x38f   :  { %v417_v55 = vadd.f32 %v416_v53, %v415_v52 }
 0x390   :  { %v428_v57 = vsel %vm414_vm5, %v426_v54, 0.0 }
 0x391   :  { %v418_v58 = vrot.slane %v417_v55, 4  ;;  %v429_v59 = vadd.f32 %v428_v57, %v427_v56 }
 0x393   :  { %v419_v60 = vadd.f32 %v418_v58, %v417_v55  ;;  %v430_v61 = vrot.slane %v429_v59, 4 }
 0x395   :  { %v420_v62 = vrot.slane %v419_v60, 2  ;;  %v431_v63 = vadd.f32 %v430_v61, %v429_v59 }
 0x397   :  { %v421_v0 = vadd.f32 %v420_v62, %v419_v60  ;;  %v432_v1 = vrot.slane %v431_v63, 2 }
 0x399   :  { %v422_v2 = vrot.slane %v421_v0, 1  ;;  %v433_v3 = vadd.f32 %v432_v1, %v431_v63 }
 0x39b   :  { %v423_v4 = vadd.f32 %v422_v2, %v421_v0  ;;  %v434_v5 = vrot.slane %v433_v3, 1 }
 0x39d   :  { %v424_v6 = vmul.f32 0.0625, %v423_v4  ;;  %v435_v7 = vadd.f32 %v434_v5, %v433_v3 }
 0x39f   :  { %v436_v8 = vmul.f32 0.0625, %v435_v7  ;;  %v437_v9 = vmul.f32 %v424_v6, %v424_v6  ;;  %v441_v19 = vsub.f32 %v412_v51, %v424_v6  ;;  %v440_v20 = vsub.f32 %v410_v48, %v424_v6 }
 0x3a0   :  { %v494_v51 = vsel %vm114_vm1, %v165_v28, %v490_v50 }
 0x3a1   :  { %v438_v10 = vsub.f32 %v436_v8, %v437_v9 }
 0x3a3   :  { %v439_v11 = vmax.f32 %v438_v10, 0.0 }
 0x3a5   :  { %v442_v12 = vadd.f32 1e-05, %v439_v11 }
 0x3a7   :  { %626 = vrsqrt.f32 %v442_v12  ;;  %vm449_vm7 = vweird.f32 %v442_v12 }
 0x3ad   :  { %v627_v13 = vpop.eup %626 }
 0x3ae   :  { %v444_v14 = vmul.f32 %v627_v13, %v442_v12  ;;  %vm450_vm6 = vweird.f32 %v627_v13 }
 0x3af   :  { %vm451_vm8 = vmor %vm449_vm7, %vm450_vm6 }
 0x3b0   :  { %v445_v15 = vmul.f32 %v627_v13, %v444_v14 }
 0x3b2   :  { %v446_v16 = vmul.f32 0.5, %v445_v15 }
 0x3b4   :  { %v447_v17 = vsub.f32 1.5, %v446_v16 }
 0x3b6   :  { %v448_v18 = vmul.f32 %v627_v13, %v447_v17 }
 0x3b8   :  { %v452_v22 = vsel %vm451_vm8, %v627_v13, %v448_v18 }
 0x3b9   :  { %v454_v23 = vmul.f32 %v452_v22, %v441_v19  ;;  %v453_v25 = vmul.f32 %v452_v22, %v440_v20 }
 0x3bb   :  { %v456_v30 = vmul.f32 %v620_v21, %v453_v25  ;;  %v457_v31 = vmul.f32 %v620_v21, %v454_v23 }
 0x3bd   :  { %v459_v32 = vadd.f32 %v621_v29, %v456_v30  ;;  %v460_v35 = vadd.f32 %v621_v29, %v457_v31 }
 0x3bf   :  { %v461_v34 = vmax.f32 %v459_v32, 0.0  ;;  %v462_v38 = vmax.f32 %v460_v35, 0.0 }
 0x3c1   :  { %v464_v36 = vmul.f32 %v622_v33, %v461_v34  ;;  %v465_v39 = vmul.f32 %v622_v33, %v462_v38 }
 0x3c3   :  { %v466_v37 = vsel %vm414_vm5, %v464_v36, 0.0  ;;  %v469_v40 = vsel %vm414_vm5, %v465_v39, 0.0 }
 0x3c4   :  { %467 = vadd.xlane.f32.xlu1 %v466_v37 }
 0x3cc   :  { %470 = vadd.xlane.f32.xlu1 %v469_v40 }
 0x437   :  { %v468_v42 = vpop.xlane.xlu1 %467 }
 0x438   :  { %v473_v43 = vadd.f32 %v623_v41, %v468_v42 }
 0x43a   :  { %477 = vperm.xlu0 %612, %v473_v43  }
 0x43f   :  { %v471_v44 = vpop.xlane.xlu1 %470 }
 0x440   :  { %v474_v45 = vadd.f32 %v623_v41, %v471_v44 }
 0x442   :  { %482 = vperm.xlu1 %613, %v474_v45  }
 0x4ac   :  { %v478_v48 = vpop.permute.xlu0 %477 }
 0x4ad   :  { %v495_v49 = vsel %vm414_vm5, %v493_v47, %v478_v48 }
 0x4ae   :  { %497 = vst [vmem:[%s828_s10] sm:$0xff] %v495_v49 }
 0x4b4   :  { %v483_v52 = vpop.permute.xlu1 %482 }
 0x4b5   :  { %v496_v53 = vsel %vm414_vm5, %v494_v51, %v483_v52 }
 0x4b6   :  { %498 = vst [vmem:[%s828_s10 + $0x8] sm:$0xff] %v496_v53 }

</bundles_post_ra>
